<compile_context>
chip_gen: v7x
topology: tpu7x:2x2x1
jax: 0.10.0
libtpu: 0.0.40
codegen_flags: <defaults>
</compile_context>

<pallas_src>
import functools

import jax
import jax.numpy as jnp
from jax.experimental import pallas as pl
from jax.experimental.pallas import tpu as pltpu


def _round_up(x, m):
    return ((x + m - 1) // m) * m


def mdn_model_kernel(
    s_ref, a_ref, ns_ref,
    w1s_ref, w1a_ref, b1_ref,        # MDNDyn.linear1 (split over [s, a])
    wh_ref, bh_ref,                  # fused heads  [z_pi | z_sigma | z_mu]
    seg_ref,                         # (G*D, G) block-indicator for the D-reduction
    wr0_ref, br0_ref,                # rew_layer0
    wr1_ref, br1_ref,                # rew_layer1
    wr2t_ref, br2_ref,               # rew_layer2 (weight transposed to (1, hidden))
    out_ref,                         # (tile_b, 2): col 0 = logprob, col 1 = rew
    *, num_gauss, num_states,
):
    G = num_gauss
    GD = num_gauss * num_states

    s = s_ref[...]
    a = a_ref[...]
    ns = ns_ref[...]

    # ---------------- MDNDyn.forward ----------------
    # z_h = sin(linear1(cat([s, a], dim=1)))   (concat folded into split matmuls)
    z_h = jnp.sin(
        jnp.dot(s, w1s_ref[...], preferred_element_type=jnp.float32)
        + jnp.dot(a, w1a_ref[...], preferred_element_type=jnp.float32)
        + b1_ref[...]
    )

    # One fused head matmul, then column slices.
    heads = (
        jnp.dot(z_h, wh_ref[...], preferred_element_type=jnp.float32) + bh_ref[...]
    )                                              # (B, G + 2*G*D)
    pi_logits = heads[:, :G]                       # (B, G)
    log_sigma = jnp.clip(heads[:, G:G + GD], -20.0, 4.0)   # (B, G*D)
    mu_flat = heads[:, G + GD:]                    # (B, G*D)

    # log-softmax over mixture weights (the +0.001 shift cancels under softmax)
    pi_max = jnp.max(pi_logits, axis=-1, keepdims=True)
    shifted = pi_logits - pi_max
    log_pi = shifted - jnp.log(jnp.sum(jnp.exp(shifted), axis=-1, keepdims=True))

    # ---------------- MDNDyn.logits (flat (B, G*D) layout, j = g*D + d) --------
    # mu = mu_flat + tile(s)  and  resid = tile(ns) - mu = tile(ns - s) - mu_flat
    delta = jnp.tile(ns - s, (1, G))               # (B, G*D), one tile / one sub
    inv_sigma = jnp.exp(-log_sigma)                # EUP
    resid = (delta - mu_flat) * inv_sigma
    term = log_sigma + 0.5 * resid * resid         # (B, G*D)
    # segmented sum over d via MXU: log_pdf[b, g] = -sum_d term[b, g*D+d]
    log_pdf = -jnp.dot(term, seg_ref[...], preferred_element_type=jnp.float32)  # (B, G)

    z = log_pdf + log_pi
    z_max = jnp.max(z, axis=-1, keepdims=True)
    logprob = z_max + jnp.log(jnp.sum(jnp.exp(z - z_max), axis=-1, keepdims=True))

    # ---------------- predict_reward ----------------
    r = jnp.maximum(
        jnp.dot(s, wr0_ref[...], preferred_element_type=jnp.float32) + br0_ref[...],
        0.0,
    )
    r = jnp.maximum(
        jnp.dot(r, wr1_ref[...], preferred_element_type=jnp.float32) + br1_ref[...],
        0.0,
    )
    # N=1 head: VPU multiply + lane reduce instead of a padded MXU pass
    rew = jnp.sum(r * wr2t_ref[...], axis=-1, keepdims=True) + br2_ref[...]

    # packed lane-dense output: one store, one DMA stream
    out_ref[...] = jnp.concatenate([logprob, rew], axis=-1)


def mdn_model_forward(s, a, ns, params, *, num_gauss, num_states, tile_b_max=512):
    B = s.shape[0]
    num_actions = a.shape[1]
    G, D = num_gauss, num_states
    GD = G * D

    # ----- pad batch to a multiple of the tile (multiple of 8 sublanes) -----
    Bp = _round_up(max(B, 1), 8)
    tile_b = min(tile_b_max, Bp)
    Bp = _round_up(Bp, tile_b)
    pad = Bp - B
    if pad:
        s = jnp.pad(s, ((0, pad), (0, 0)))
        a = jnp.pad(a, ((0, pad), (0, 0)))
        ns = jnp.pad(ns, ((0, pad), (0, 0)))

    # ----- host-side weight prep -----
    # fuse the three mixture heads: [pi | sigma | mu]
    wh = jnp.concatenate([params["wpi"], params["wsig"], params["wmu"]], axis=1)
    bh = jnp.concatenate([params["bpi"], params["bsig"], params["bmu"]], axis=1)
    # (G*D, G) block indicator: seg[j, g] = 1  iff  j // D == g
    seg = (jnp.arange(GD)[:, None] // D == jnp.arange(G)[None, :]).astype(jnp.float32)
    wr2t = params["wr2"].T                          # (1, hidden)

    weights = (
        params["w1s"], params["w1a"], params["b1"],
        wh, bh, seg,
        params["wr0"], params["br0"],
        params["wr1"], params["br1"],
        wr2t, params["br2"],
    )

    grid = (Bp // tile_b,)

    def batch_spec(feat):
        return pl.BlockSpec((tile_b, feat), lambda i: (i, 0))

    def resident_spec(arr):
        # same block every grid step -> stays VMEM-resident, no re-DMA
        return pl.BlockSpec(arr.shape, lambda i: (0, 0))

    in_specs = (
        [batch_spec(num_states), batch_spec(num_actions), batch_spec(num_states)]
        + [resident_spec(w) for w in weights]
    )

    kernel = functools.partial(mdn_model_kernel, num_gauss=G, num_states=D)

    out = pl.pallas_call(
        kernel,
        out_shape=jax.ShapeDtypeStruct((Bp, 2), jnp.float32),
        grid_spec=pltpu.PrefetchScalarGridSpec(
            num_scalar_prefetch=0,
            grid=grid,
            in_specs=in_specs,
            out_specs=pl.BlockSpec((tile_b, 2), lambda i: (i, 0)),
        ),
        compiler_params=pltpu.CompilerParams(
            dimension_semantics=("parallel",),
        ),
    )(s, a, ns, *weights)

    logprob = out[:B, 0:1]
    rew = out[:B, 1:2]
    return logprob, rew


def init_params(key, num_states, num_actions, hidden, n_gaussians):
    num_inputs = num_states + num_actions
    keys = jax.random.split(key, 8)

    def lin(k, fan_in, fan_out):
        kw, kb = jax.random.split(k)
        bound = 1.0 / jnp.sqrt(fan_in)
        w = jax.random.uniform(kw, (fan_in, fan_out), jnp.float32, -bound, bound)
        b = jax.random.uniform(kb, (1, fan_out), jnp.float32, -bound, bound)
        return w, b

    w1, b1 = lin(keys[0], num_inputs, hidden)
    wpi, bpi = lin(keys[1], hidden, n_gaussians)
    wsig, bsig = lin(keys[2], hidden, n_gaussians * num_states)
    wmu, bmu = lin(keys[3], hidden, n_gaussians * num_states)
    wr0, br0 = lin(keys[4], num_states, hidden)
    wr1, br1 = lin(keys[5], hidden, hidden)
    wr2, br2 = lin(keys[6], hidden, 1)

    return dict(
        w1s=w1[:num_states], w1a=w1[num_states:], b1=b1,
        wpi=wpi, bpi=bpi, wsig=wsig, bsig=bsig, wmu=wmu, bmu=bmu,
        wr0=wr0, br0=br0, wr1=wr1, br1=br1, wr2=wr2, br2=br2,
    )


def reference_forward(s, a, ns, p, *, num_gauss, num_states):
    # pure-JAX reference mirroring the PyTorch module exactly
    z_h = jnp.sin(s @ p["w1s"] + a @ p["w1a"] + p["b1"])
    pi = jax.nn.softmax(z_h @ p["wpi"] + p["bpi"] + 0.001, axis=-1)
    log_sigma = jnp.clip(z_h @ p["wsig"] + p["bsig"], -20.0, 4.0)
    sigma = jnp.exp(log_sigma).reshape(-1, num_gauss, num_states)
    mu = (z_h @ p["wmu"] + p["bmu"]).reshape(-1, num_gauss, num_states) + s[:, None, :]
    log_pi = jnp.log(pi)
    log_pdf = -jnp.sum(jnp.log(sigma), axis=2) - 0.5 * jnp.sum(
        ((ns[:, None, :] - mu) / sigma) ** 2, axis=2
    )
    logprob = jax.scipy.special.logsumexp(log_pdf + log_pi, axis=1, keepdims=True)
    r = jax.nn.relu(s @ p["wr0"] + p["br0"])
    r = jax.nn.relu(r @ p["wr1"] + p["br1"])
    rew = r @ p["wr2"] + p["br2"]
    return logprob, rew


if __name__ == "__main__":
    num_states, num_actions = 4, 2
    hidden, n_gaussians = 32, 8

    key = jax.random.PRNGKey(0)
    kp, ks, ka, kn = jax.random.split(key, 4)
    params = init_params(kp, num_states, num_actions, hidden, n_gaussians)

    # --- small primary check (grid of 1) ---
    B = 8
    s = jax.random.normal(ks, (B, num_states), jnp.float32)
    a = jax.random.normal(ka, (B, num_actions), jnp.float32)
    ns = jax.random.normal(kn, (B, num_states), jnp.float32)

    logprob, rew = mdn_model_forward(
        s, a, ns, params, num_gauss=n_gaussians, num_states=num_states
    )
    jax.block_until_ready((logprob, rew))

    ref_lp, ref_rew = reference_forward(
        s, a, ns, params, num_gauss=n_gaussians, num_states=num_states
    )
    assert logprob.shape == (B, 1) and rew.shape == (B, 1)
    assert jnp.allclose(logprob, ref_lp, atol=1e-4, rtol=1e-4)
    assert jnp.allclose(rew, ref_rew, atol=1e-4, rtol=1e-4)

    # --- multi-tile check (exercises batch grid + padding) ---
    B2 = 200
    s2 = jax.random.normal(ks, (B2, num_states), jnp.float32)
    a2 = jax.random.normal(ka, (B2, num_actions), jnp.float32)
    ns2 = jax.random.normal(kn, (B2, num_states), jnp.float32)
    lp2, rew2 = mdn_model_forward(
        s2, a2, ns2, params, num_gauss=n_gaussians, num_states=num_states,
        tile_b_max=64,
    )
    jax.block_until_ready((lp2, rew2))
    ref_lp2, ref_rew2 = reference_forward(
        s2, a2, ns2, params, num_gauss=n_gaussians, num_states=num_states
    )
    assert jnp.allclose(lp2, ref_lp2, atol=1e-4, rtol=1e-4)
    assert jnp.allclose(rew2, ref_rew2, atol=1e-4, rtol=1e-4)

    print("KERNEL_OK")
</pallas_src>

<mosaic_0001>
module attributes {stable_mosaic.version = 11 : i64} {
  func.func @mdn_model_kernel(%arg0: i32, %arg1: memref<8x4xf32, #tpu.memory_space<vmem>>, %arg2: memref<8x2xf32, #tpu.memory_space<vmem>>, %arg3: memref<8x4xf32, #tpu.memory_space<vmem>>, %arg4: memref<4x32xf32, #tpu.memory_space<vmem>>, %arg5: memref<2x32xf32, #tpu.memory_space<vmem>>, %arg6: memref<1x32xf32, #tpu.memory_space<vmem>>, %arg7: memref<32x72xf32, #tpu.memory_space<vmem>>, %arg8: memref<1x72xf32, #tpu.memory_space<vmem>>, %arg9: memref<32x8xf32, #tpu.memory_space<vmem>>, %arg10: memref<4x32xf32, #tpu.memory_space<vmem>>, %arg11: memref<1x32xf32, #tpu.memory_space<vmem>>, %arg12: memref<32x32xf32, #tpu.memory_space<vmem>>, %arg13: memref<1x32xf32, #tpu.memory_space<vmem>>, %arg14: memref<1x32xf32, #tpu.memory_space<vmem>>, %arg15: memref<1x1xf32, #tpu.memory_space<vmem>>, %arg16: memref<8x2xf32, #tpu.memory_space<vmem>>) attributes {dimension_semantics = [#tpu.dimension_semantics<parallel>], iteration_bounds = array<i64: 1>, scalar_prefetch = 0 : i64, scratch_operands = 0 : i64, tpu.core_type = #tpu.core_type<tc>, window_params = [{transform_indices = @transform_0, window_bounds = array<i64: 8, 4>}, {transform_indices = @transform_1, window_bounds = array<i64: 8, 2>}, {transform_indices = @transform_2, window_bounds = array<i64: 8, 4>}, {pipeline_mode = #tpu.pipeline_mode<synchronous>, transform_indices = @transform_3, window_bounds = array<i64: 4, 32>}, {pipeline_mode = #tpu.pipeline_mode<synchronous>, transform_indices = @transform_4, window_bounds = array<i64: 2, 32>}, {pipeline_mode = #tpu.pipeline_mode<synchronous>, transform_indices = @transform_5, window_bounds = array<i64: 1, 32>}, {pipeline_mode = #tpu.pipeline_mode<synchronous>, transform_indices = @transform_6, window_bounds = array<i64: 32, 72>}, {pipeline_mode = #tpu.pipeline_mode<synchronous>, transform_indices = @transform_7, window_bounds = array<i64: 1, 72>}, {pipeline_mode = #tpu.pipeline_mode<synchronous>, transform_indices = @transform_8, window_bounds = array<i64: 32, 8>}, {pipeline_mode = #tpu.pipeline_mode<synchronous>, transform_indices = @transform_9, window_bounds = array<i64: 4, 32>}, {pipeline_mode = #tpu.pipeline_mode<synchronous>, transform_indices = @transform_10, window_bounds = array<i64: 1, 32>}, {pipeline_mode = #tpu.pipeline_mode<synchronous>, transform_indices = @transform_11, window_bounds = array<i64: 32, 32>}, {pipeline_mode = #tpu.pipeline_mode<synchronous>, transform_indices = @transform_12, window_bounds = array<i64: 1, 32>}, {pipeline_mode = #tpu.pipeline_mode<synchronous>, transform_indices = @transform_13, window_bounds = array<i64: 1, 32>}, {pipeline_mode = #tpu.pipeline_mode<synchronous>, transform_indices = @transform_14, window_bounds = array<i64: 1, 1>}, {transform_indices = @transform_15, window_bounds = array<i64: 8, 2>}]} {
    %c0 = arith.constant 0 : index
    %c0_0 = arith.constant 0 : index
    %0 = vector.load %arg1[%c0, %c0_0] : memref<8x4xf32, #tpu.memory_space<vmem>>, vector<8x4xf32>
    %c0_1 = arith.constant 0 : index
    %c0_2 = arith.constant 0 : index
    %1 = vector.load %arg2[%c0_1, %c0_2] : memref<8x2xf32, #tpu.memory_space<vmem>>, vector<8x2xf32>
    %c0_3 = arith.constant 0 : index
    %c0_4 = arith.constant 0 : index
    %2 = vector.load %arg3[%c0_3, %c0_4] : memref<8x4xf32, #tpu.memory_space<vmem>>, vector<8x4xf32>
    %c0_5 = arith.constant 0 : index
    %c0_6 = arith.constant 0 : index
    %3 = vector.load %arg4[%c0_5, %c0_6] : memref<4x32xf32, #tpu.memory_space<vmem>>, vector<4x32xf32>
    %cst = arith.constant dense<0.000000e+00> : vector<8x32xf32>
    %4 = tpu.matmul %0, %3, %cst {dimension_numbers = #tpu.dot_dimension_numbers<[1], [0], [0], [1], [0, 0, 1, 1], [], []>} : vector<8x4xf32>, vector<4x32xf32>, vector<8x32xf32> -> vector<8x32xf32>
    %c0_7 = arith.constant 0 : index
    %c0_8 = arith.constant 0 : index
    %5 = vector.load %arg5[%c0_7, %c0_8] : memref<2x32xf32, #tpu.memory_space<vmem>>, vector<2x32xf32>
    %cst_9 = arith.constant dense<0.000000e+00> : vector<8x32xf32>
    %6 = tpu.matmul %1, %5, %cst_9 {dimension_numbers = #tpu.dot_dimension_numbers<[1], [0], [0], [1], [0, 0, 1, 1], [], []>} : vector<8x2xf32>, vector<2x32xf32>, vector<8x32xf32> -> vector<8x32xf32>
    %7 = arith.addf %4, %6 : vector<8x32xf32>
    %c0_10 = arith.constant 0 : index
    %c0_11 = arith.constant 0 : index
    %8 = vector.load %arg6[%c0_10, %c0_11] : memref<1x32xf32, #tpu.memory_space<vmem>>, vector<1x32xf32>
    %9 = vector.broadcast %8 : vector<1x32xf32> to vector<8x32xf32>
    %10 = arith.addf %7, %9 : vector<8x32xf32>
    %11 = math.sin %10 : vector<8x32xf32>
    %c0_12 = arith.constant 0 : index
    %c0_13 = arith.constant 0 : index
    %12 = vector.load %arg7[%c0_12, %c0_13] : memref<32x72xf32, #tpu.memory_space<vmem>>, vector<32x72xf32>
    %cst_14 = arith.constant dense<0.000000e+00> : vector<8x72xf32>
    %13 = tpu.matmul %11, %12, %cst_14 {dimension_numbers = #tpu.dot_dimension_numbers<[1], [0], [0], [1], [0, 0, 1, 1], [], []>} : vector<8x32xf32>, vector<32x72xf32>, vector<8x72xf32> -> vector<8x72xf32>
    %c0_15 = arith.constant 0 : index
    %c0_16 = arith.constant 0 : index
    %14 = vector.load %arg8[%c0_15, %c0_16] : memref<1x72xf32, #tpu.memory_space<vmem>>, vector<1x72xf32>
    %15 = vector.broadcast %14 : vector<1x72xf32> to vector<8x72xf32>
    %16 = arith.addf %13, %15 : vector<8x72xf32>
    %17 = vector.extract_strided_slice %16 {offsets = [0, 0], sizes = [8, 8], strides = [1, 1]} : vector<8x72xf32> to vector<8x8xf32>
    %18 = vector.extract_strided_slice %16 {offsets = [0, 8], sizes = [8, 32], strides = [1, 1]} : vector<8x72xf32> to vector<8x32xf32>
    %cst_17 = arith.constant -2.000000e+01 : f32
    %cst_18 = arith.constant 4.000000e+00 : f32
    %19 = vector.broadcast %cst_17 : f32 to vector<8x32xf32>
    %20 = arith.maximumf %19, %18 : vector<8x32xf32>
    %21 = vector.broadcast %cst_18 : f32 to vector<8x32xf32>
    %22 = arith.minimumf %21, %20 : vector<8x32xf32>
    %23 = vector.extract_strided_slice %16 {offsets = [0, 40], sizes = [8, 32], strides = [1, 1]} : vector<8x72xf32> to vector<8x32xf32>
    %cst_19 = arith.constant dense<0xFF800000> : vector<8xf32>
    %24 = vector.multi_reduction <maximumf>, %17, %cst_19 [1] : vector<8x8xf32> to vector<8xf32>
    %25 = vector.shape_cast %24 : vector<8xf32> to vector<8x1xf32>
    %26 = vector.broadcast %25 : vector<8x1xf32> to vector<8x8xf32>
    %27 = arith.subf %17, %26 : vector<8x8xf32>
    %28 = math.exp %27 : vector<8x8xf32>
    %cst_20 = arith.constant dense<0.000000e+00> : vector<8xf32>
    %29 = vector.multi_reduction <add>, %28, %cst_20 [1] : vector<8x8xf32> to vector<8xf32>
    %30 = vector.shape_cast %29 : vector<8xf32> to vector<8x1xf32>
    %31 = math.log %30 : vector<8x1xf32>
    %32 = vector.broadcast %31 : vector<8x1xf32> to vector<8x8xf32>
    %33 = arith.subf %27, %32 : vector<8x8xf32>
    %34 = arith.subf %2, %0 : vector<8x4xf32>
    %35 = tpu.concatenate %34, %34, %34, %34, %34, %34, %34, %34 in 1 : vector<8x4xf32>, vector<8x4xf32>, vector<8x4xf32>, vector<8x4xf32>, vector<8x4xf32>, vector<8x4xf32>, vector<8x4xf32>, vector<8x4xf32> -> vector<8x32xf32>
    %cst_21 = arith.constant 0.000000e+00 : f32
    %36 = vector.broadcast %cst_21 : f32 to vector<8x32xf32>
    %37 = arith.subf %36, %22 : vector<8x32xf32>
    %38 = math.exp %37 : vector<8x32xf32>
    %39 = arith.subf %35, %23 : vector<8x32xf32>
    %40 = arith.mulf %39, %38 : vector<8x32xf32>
    %cst_22 = arith.constant 5.000000e-01 : f32
    %41 = vector.broadcast %cst_22 : f32 to vector<8x32xf32>
    %42 = arith.mulf %41, %40 : vector<8x32xf32>
    %43 = arith.mulf %42, %40 : vector<8x32xf32>
    %44 = arith.addf %22, %43 : vector<8x32xf32>
    %c0_23 = arith.constant 0 : index
    %c0_24 = arith.constant 0 : index
    %45 = vector.load %arg9[%c0_23, %c0_24] : memref<32x8xf32, #tpu.memory_space<vmem>>, vector<32x8xf32>
    %cst_25 = arith.constant dense<0.000000e+00> : vector<8x8xf32>
    %46 = tpu.matmul %44, %45, %cst_25 {dimension_numbers = #tpu.dot_dimension_numbers<[1], [0], [0], [1], [0, 0, 1, 1], [], []>} : vector<8x32xf32>, vector<32x8xf32>, vector<8x8xf32> -> vector<8x8xf32>
    %cst_26 = arith.constant 0.000000e+00 : f32
    %47 = vector.broadcast %cst_26 : f32 to vector<8x8xf32>
    %48 = arith.subf %47, %46 : vector<8x8xf32>
    %49 = arith.addf %48, %33 : vector<8x8xf32>
    %cst_27 = arith.constant dense<0xFF800000> : vector<8xf32>
    %50 = vector.multi_reduction <maximumf>, %49, %cst_27 [1] : vector<8x8xf32> to vector<8xf32>
    %51 = vector.shape_cast %50 : vector<8xf32> to vector<8x1xf32>
    %52 = vector.broadcast %51 : vector<8x1xf32> to vector<8x8xf32>
    %53 = arith.subf %49, %52 : vector<8x8xf32>
    %54 = math.exp %53 : vector<8x8xf32>
    %cst_28 = arith.constant dense<0.000000e+00> : vector<8xf32>
    %55 = vector.multi_reduction <add>, %54, %cst_28 [1] : vector<8x8xf32> to vector<8xf32>
    %56 = vector.shape_cast %55 : vector<8xf32> to vector<8x1xf32>
    %57 = math.log %56 : vector<8x1xf32>
    %58 = arith.addf %51, %57 : vector<8x1xf32>
    %c0_29 = arith.constant 0 : index
    %c0_30 = arith.constant 0 : index
    %59 = vector.load %arg10[%c0_29, %c0_30] : memref<4x32xf32, #tpu.memory_space<vmem>>, vector<4x32xf32>
    %cst_31 = arith.constant dense<0.000000e+00> : vector<8x32xf32>
    %60 = tpu.matmul %0, %59, %cst_31 {dimension_numbers = #tpu.dot_dimension_numbers<[1], [0], [0], [1], [0, 0, 1, 1], [], []>} : vector<8x4xf32>, vector<4x32xf32>, vector<8x32xf32> -> vector<8x32xf32>
    %c0_32 = arith.constant 0 : index
    %c0_33 = arith.constant 0 : index
    %61 = vector.load %arg11[%c0_32, %c0_33] : memref<1x32xf32, #tpu.memory_space<vmem>>, vector<1x32xf32>
    %62 = vector.broadcast %61 : vector<1x32xf32> to vector<8x32xf32>
    %63 = arith.addf %60, %62 : vector<8x32xf32>
    %cst_34 = arith.constant 0.000000e+00 : f32
    %64 = vector.broadcast %cst_34 : f32 to vector<8x32xf32>
    %65 = arith.maximumf %63, %64 : vector<8x32xf32>
    %c0_35 = arith.constant 0 : index
    %c0_36 = arith.constant 0 : index
    %66 = vector.load %arg12[%c0_35, %c0_36] : memref<32x32xf32, #tpu.memory_space<vmem>>, vector<32x32xf32>
    %cst_37 = arith.constant dense<0.000000e+00> : vector<8x32xf32>
    %67 = tpu.matmul %65, %66, %cst_37 {dimension_numbers = #tpu.dot_dimension_numbers<[1], [0], [0], [1], [0, 0, 1, 1], [], []>} : vector<8x32xf32>, vector<32x32xf32>, vector<8x32xf32> -> vector<8x32xf32>
    %c0_38 = arith.constant 0 : index
    %c0_39 = arith.constant 0 : index
    %68 = vector.load %arg13[%c0_38, %c0_39] : memref<1x32xf32, #tpu.memory_space<vmem>>, vector<1x32xf32>
    %69 = vector.broadcast %68 : vector<1x32xf32> to vector<8x32xf32>
    %70 = arith.addf %67, %69 : vector<8x32xf32>
    %cst_40 = arith.constant 0.000000e+00 : f32
    %71 = vector.broadcast %cst_40 : f32 to vector<8x32xf32>
    %72 = arith.maximumf %70, %71 : vector<8x32xf32>
    %c0_41 = arith.constant 0 : index
    %c0_42 = arith.constant 0 : index
    %73 = vector.load %arg14[%c0_41, %c0_42] : memref<1x32xf32, #tpu.memory_space<vmem>>, vector<1x32xf32>
    %74 = vector.broadcast %73 : vector<1x32xf32> to vector<8x32xf32>
    %75 = arith.mulf %72, %74 : vector<8x32xf32>
    %cst_43 = arith.constant dense<0.000000e+00> : vector<8xf32>
    %76 = vector.multi_reduction <add>, %75, %cst_43 [1] : vector<8x32xf32> to vector<8xf32>
    %77 = vector.shape_cast %76 : vector<8xf32> to vector<8x1xf32>
    %c0_44 = arith.constant 0 : index
    %c0_45 = arith.constant 0 : index
    %78 = vector.load %arg15[%c0_44, %c0_45] : memref<1x1xf32, #tpu.memory_space<vmem>>, vector<1x1xf32>
    %79 = vector.broadcast %78 : vector<1x1xf32> to vector<8x1xf32>
    %80 = arith.addf %77, %79 : vector<8x1xf32>
    %81 = tpu.concatenate %58, %80 in 1 : vector<8x1xf32>, vector<8x1xf32> -> vector<8x2xf32>
    %c0_46 = arith.constant 0 : index
    %c0_47 = arith.constant 0 : index
    %82 = vector.load %arg16[%c0_46, %c0_47] : memref<8x2xf32, #tpu.memory_space<vmem>>, vector<8x2xf32>
    tpu.vector_store %arg16[%c0_46, %c0_47], %81 {strides = array<i32>} : memref<8x2xf32, #tpu.memory_space<vmem>>, vector<8x2xf32>,
    return
  }
  func.func @transform_0(%arg0: i32) -> (i32, i32) {
    %c0_i32 = arith.constant 0 : i32
    %c0_i32_0 = arith.constant 0 : i32
    return %arg0, %c0_i32 : i32, i32
  }
  func.func @transform_1(%arg0: i32) -> (i32, i32) {
    %c0_i32 = arith.constant 0 : i32
    %c0_i32_0 = arith.constant 0 : i32
    return %arg0, %c0_i32 : i32, i32
  }
  func.func @transform_2(%arg0: i32) -> (i32, i32) {
    %c0_i32 = arith.constant 0 : i32
    %c0_i32_0 = arith.constant 0 : i32
    return %arg0, %c0_i32 : i32, i32
  }
  func.func @transform_3(%arg0: i32) -> (i32, i32) {
    %c0_i32 = arith.constant 0 : i32
    %c0_i32_0 = arith.constant 0 : i32
    %c0_i32_1 = arith.constant 0 : i32
    return %c0_i32, %c0_i32_0 : i32, i32
  }
  func.func @transform_4(%arg0: i32) -> (i32, i32) {
    %c0_i32 = arith.constant 0 : i32
    %c0_i32_0 = arith.constant 0 : i32
    %c0_i32_1 = arith.constant 0 : i32
    return %c0_i32, %c0_i32_0 : i32, i32
  }
  func.func @transform_5(%arg0: i32) -> (i32, i32) {
    %c0_i32 = arith.constant 0 : i32
    %c0_i32_0 = arith.constant 0 : i32
    %c0_i32_1 = arith.constant 0 : i32
    return %c0_i32, %c0_i32_0 : i32, i32
  }
  func.func @transform_6(%arg0: i32) -> (i32, i32) {
    %c0_i32 = arith.constant 0 : i32
    %c0_i32_0 = arith.constant 0 : i32
    %c0_i32_1 = arith.constant 0 : i32
    return %c0_i32, %c0_i32_0 : i32, i32
  }
  func.func @transform_7(%arg0: i32) -> (i32, i32) {
    %c0_i32 = arith.constant 0 : i32
    %c0_i32_0 = arith.constant 0 : i32
    %c0_i32_1 = arith.constant 0 : i32
    return %c0_i32, %c0_i32_0 : i32, i32
  }
  func.func @transform_8(%arg0: i32) -> (i32, i32) {
    %c0_i32 = arith.constant 0 : i32
    %c0_i32_0 = arith.constant 0 : i32
    %c0_i32_1 = arith.constant 0 : i32
    return %c0_i32, %c0_i32_0 : i32, i32
  }
  func.func @transform_9(%arg0: i32) -> (i32, i32) {
    %c0_i32 = arith.constant 0 : i32
    %c0_i32_0 = arith.constant 0 : i32
    %c0_i32_1 = arith.constant 0 : i32
    return %c0_i32, %c0_i32_0 : i32, i32
  }
  func.func @transform_10(%arg0: i32) -> (i32, i32) {
    %c0_i32 = arith.constant 0 : i32
    %c0_i32_0 = arith.constant 0 : i32
    %c0_i32_1 = arith.constant 0 : i32
    return %c0_i32, %c0_i32_0 : i32, i32
  }
  func.func @transform_11(%arg0: i32) -> (i32, i32) {
    %c0_i32 = arith.constant 0 : i32
    %c0_i32_0 = arith.constant 0 : i32
    %c0_i32_1 = arith.constant 0 : i32
    return %c0_i32, %c0_i32_0 : i32, i32
  }
  func.func @transform_12(%arg0: i32) -> (i32, i32) {
    %c0_i32 = arith.constant 0 : i32
    %c0_i32_0 = arith.constant 0 : i32
    %c0_i32_1 = arith.constant 0 : i32
    return %c0_i32, %c0_i32_0 : i32, i32
  }
  func.func @transform_13(%arg0: i32) -> (i32, i32) {
    %c0_i32 = arith.constant 0 : i32
    %c0_i32_0 = arith.constant 0 : i32
    %c0_i32_1 = arith.constant 0 : i32
    return %c0_i32, %c0_i32_0 : i32, i32
  }
  func.func @transform_14(%arg0: i32) -> (i32, i32) {
    %c0_i32 = arith.constant 0 : i32
    %c0_i32_0 = arith.constant 0 : i32
    %c0_i32_1 = arith.constant 0 : i32
    return %c0_i32, %c0_i32_0 : i32, i32
  }
  func.func @transform_15(%arg0: i32) -> (i32, i32) {
    %c0_i32 = arith.constant 0 : i32
    %c0_i32_0 = arith.constant 0 : i32
    return %arg0, %c0_i32 : i32, i32
  }
}

</mosaic_0001>

<bundles_post_ra>
// kernel: tpu_custom_call.1
= control target key start
LH: loop header
LB: loop body
LE: loop exit
PB: predicated region body
PF: predicated region fallthrough
CT: control target
= control target key end

     0   :  { %vm61_vm0 = vcmask 1041408   ;;  %vm139_vm1 = vcmask 1043456   ;;  %v913_v0 = vmov 0.0   ;;  %vm57_vm2 = vcmask 15360   ;;  %s916_s17 = smov 4   ;;  %s917_s18 = smov 12   ;;  %s1164_s4 = inlined_call_operand.vmem [shape: f32[2,32], index: 4, kind: input, shape index: {}]   ;;  %s1165_s3 = inlined_call_operand.vmem [shape: f32[4,32], index: 3, kind: input, shape index: {}]   ;;  %s1166_s1 = inlined_call_operand.vmem [shape: f32[8,2], index: 1, kind: input, shape index: {}]   ;;  %s1167_s0 = inlined_call_operand.vmem [shape: f32[8,4], index: 0, kind: input, shape index: {}]   ;;  %s1168_s6 = inlined_call_operand.vmem [shape: f32[32,72], index: 6, kind: input, shape index: {}]   ;;  %s1169_s2 = inlined_call_operand.vmem [shape: f32[8,4], index: 2, kind: input, shape index: {}]   ;;  %s1170_s5 = inlined_call_operand.vmem [shape: f32[1,32], index: 5, kind: input, shape index: {}]   ;;  %s1171_s7 = inlined_call_operand.vmem [shape: f32[1,72], index: 7, kind: input, shape index: {}]   ;;  %s1172_s9 = inlined_call_operand.vmem [shape: f32[4,32], index: 9, kind: input, shape index: {}]   ;;  %s1173_s8 = inlined_call_operand.vmem [shape: f32[32,8], index: 8, kind: input, shape index: {}]   ;;  %s1174_s11 = inlined_call_operand.vmem [shape: f32[32,32], index: 11, kind: input, shape index: {}]   ;;  %s1175_s10 = inlined_call_operand.vmem [shape: f32[1,32], index: 10, kind: input, shape index: {}]   ;;  %s1176_s12 = inlined_call_operand.vmem [shape: f32[1,32], index: 12, kind: input, shape index: {}]   ;;  %s1177_s13 = inlined_call_operand.vmem [shape: f32[1,32], index: 13, kind: input, shape index: {}]   ;;  %s1178_s14 = inlined_call_operand.<no memory space> [shape: f32[1,1], index: 14, kind: input, shape index: {}]   ;;  %s1179_s15 = inlined_call_operand.vmem [shape: f32[8,2], index: 15, kind: output, shape index: {}]  }
   0x1   :  { %810 = vmatprep.subr.mxu0 %v913_v0  ;;  %815 = vmatprep.subr.mxu1 %v913_v0  ;;  %v56_v1 = vld [vmem:[%s1164_s4] sm:$0x3]  ;;  %vm914_vm3 = vmmov 0   ;;  %vm135_vm4 = vcmask 31744   ;;  %v915_v5 = vmov 0.0|0.0   ;;  %v326_v7 = vld [vmem:[%s1168_s6 + $0x8] sm:$0xff] }
   0x2   :  { %v55_v2 = vld [vmem:[%s1165_s3] sm:$0xf]  ;;  %811 = vmatpush3.msk.msra.mxu0 %vm61_vm0, %v56_v1  ;;  %812 = vmatprep.mubr.msk.f32.mxu0 %vm914_vm3, %v913_v0  ;;  %v327_v8 = vld [vmem:[%s1168_s6 + $0x10] sm:$0xff]  ;;  %v328_v10 = vld [vmem:[%s1168_s6 + $0x18] sm:$0xff]  ;;  %s919_s19 = smov 16   ;;  %s920_s20 = smov 20  }
   0x3   :  { %v53_v3 = vld [vmem:[%s1166_s1] sm:$0xff]  ;;  %816 = vmatpush3.msk.msra.mxu1 %vm139_vm1, %v55_v2  ;;  %817 = vmatprep.mubr.msk.f32.mxu1 %vm914_vm3, %v913_v0  ;;  %v862_v11 = vpack.c.bf16 %v328_v10, %v327_v8  ;;  %v922_v31 = vmov 683565275   ;;  %v923_v33 = vmov 2475754826   ;;  %s929_s25 = smov 88  }
   0x4   :  { %v1028_v4 = vld [vmem:[%s1167_s0] sm:$0xff]  ;;  %813 = vmatmul.mubr.msk.f32.vlgmr.msra.gmra.mrb[0].mxu0 %vm57_vm2, %v53_v3  ;;  %858 = vmatprep.subr.bf16.mxu0 %v915_v5  ;;  %v924_v36 = vmov 2131351028   ;;  %v925_v39 = vmov 2102212464   ;;  %s930_s0 = smov 120  }
   0x5   :  { %818 = vmatmul.mubr.msk.f32.vlgmr.msra.gmra.mrb[0].mxu1 %vm135_vm4, %v1028_v4  ;;  %828 = vmatprep.mubr.msk.f32.mxu0 %vm914_vm3, %v913_v0  ;;  %v325_v6 = vld [vmem:[%s1168_s6] sm:$0xff]  ;;  %s918_s6 = smov 8   ;;  %v926_v42 = vmov 920167782   ;;  %v927_v45 = vmov 1326507024  }
   0x6   :  { %839 = vmatprep.mubr.msk.f32.mxu1 %vm914_vm3, %v913_v0  ;;  %864 = vmatprep.subr.bf16.mxu1 %v915_v5  ;;  %v859_v9 = vpack.c.bf16 %v326_v7, %v325_v6  ;;  %v54_v12 = vld [vmem:[%s1169_s2] sm:$0xff]  ;;  %s921_s2 = smov 24  }
   0x7   :  { %v1060_v13 = vsub.f32 %v54_v12, %v1028_v4  ;;  %v774_v16 = vld [vmem:[%s1170_s5] ss:$0 sm:$0xff]  ;;  %s928_s5 = smov 28  }
   0x8   :  { %860 = vmatpush3.bf16.msra.mxu0 %v859_v9 }
   0x9   :  { %861 = vmatprep.subr.bf16.mxu0 %v915_v5  ;;  %427 = vrot.lane.b32.xlu0 %v1060_v13, %s916_s17 }
   0xa   :  { %433 = vrot.lane.b32.xlu1 %v1060_v13, %s917_s18 }
   0xc   :  { %863 = vmatpush3.bf16.msra.mxu0 %v862_v11 }
   0xd   :  { %842 = vmatprep.subr.mxu0 %v913_v0  ;;  %430 = vrot.lane.b32.xlu0 %v1060_v13, %s918_s6 }
   0xe   :  { %436 = vrot.lane.b32.xlu1 %v1060_v13, %s919_s19 }
  0x11   :  { %439 = vrot.lane.b32.xlu0 %v1060_v13, %s920_s20 }
  0x12   :  { %442 = vrot.lane.b32.xlu1 %v1060_v13, %s921_s2 }
  0x15   :  { %445 = vrot.lane.b32.xlu0 %v1060_v13, %s928_s5 }
  0xd7   :  { %v131_v14 = vpop.f32.mrb[0].mxu0 }
  0xd8   :  { %v209_v15 = vpop.f32.mrb[0].mxu1  ;;  %v814_v18 = vpop.f32.mrb[1].mxu0 }
  0xd9   :  { %v210_v17 = vadd.f32 %v209_v15, %v131_v14  ;;  %v819_v19 = vpop.f32.mrb[1].mxu1 }
  0xdb   :  { %v1072_v20 = vadd.f32 %v774_v16, %v210_v17 }
  0xdd   :  { %v224_v21 = vand.u32 2139095040, %v1072_v20  ;;  %v221_v25 = vand.u32 2147483647, %v1072_v20  ;;  %vm223_vm12 = vcmp.lt.s32.totalorder %v1072_v20, 0 }
  0xdf   :  { %v225_v22 = vshrl.u32 %v224_v21, 23  ;;  %v228_v28 = vand.u32 8388607, %v221_v25  ;;  %vm222_vm13 = vcmp.le.f32.partialorder %v221_v25, 0.7853982 }
  0xe1   :  { %v775_v23 = vadd.s32 4294967169, %v225_v22  ;;  %v229_v47 = vor.u32 8388608, %v228_v28 }
  0xe3   :  { %v231_v24 = vadd.s32 1, %v775_v23  ;;  %v269_v61 = vshll.u32 %v229_v47, 8 }
  0xe5   :  { %vm232_vm5 = vcmp.gt.s32.totalorder %v231_v24, 0 }
  0xe6   :  { %v233_v26 = vsel %vm232_vm5, %v231_v24, 0  ;;  %vm336_vm5 = vcmask 261120  }
  0xe7   :  { %v235_v27 = vand.u32 31, %v233_v26  ;;  %v234_v30 = vshrl.u32 %v233_v26, 5 }
  0xe9   :  { %v236_v29 = vsub.s32 32, %v235_v27  ;;  %v238_v32 = vshll.u32 %v922_v31, %v235_v27  ;;  %v241_v34 = vshll.u32 %v923_v33, %v235_v27  ;;  %v244_v38 = vshll.u32 %v924_v36, %v235_v27 }
  0xea   :  { %v247_v41 = vshll.u32 %v925_v39, %v235_v27  ;;  %v250_v44 = vshll.u32 %v926_v42, %v235_v27  ;;  %vm253_vm6 = vcmp.lt.s32.totalorder %v234_v30, 1  ;;  %vm256_vm7 = vcmp.lt.s32.totalorder %v234_v30, 4 }
  0xeb   :  { %v239_v35 = vshrl.u32 %v923_v33, %v236_v29  ;;  %v242_v37 = vshrl.u32 %v924_v36, %v236_v29  ;;  %v245_v40 = vshrl.u32 %v925_v39, %v236_v29  ;;  %v248_v43 = vshrl.u32 %v926_v42, %v236_v29 }
  0xec   :  { %v251_v46 = vshrl.u32 %v927_v45, %v236_v29  ;;  %v237_v56 = vshrl.u32 %v922_v31, %v236_v29  ;;  %vm255_vm8 = vcmp.lt.s32.totalorder %v234_v30, 3  ;;  %vm254_vm9 = vcmp.lt.s32.totalorder %v234_v30, 2 }
  0xed   :  { %v240_v48 = vor.u32 %v239_v35, %v238_v32  ;;  %v243_v49 = vor.u32 %v242_v37, %v241_v34  ;;  %v246_v50 = vor.u32 %v245_v40, %v244_v38  ;;  %v249_v51 = vor.u32 %v248_v43, %v247_v41 }
  0xee   :  { %v252_v52 = vor.u32 %v251_v46, %v250_v44 }
  0xef   :  { %v258_v53 = vsel %vm256_vm7, %v246_v50, 2102212464  ;;  %v261_v54 = vsel %vm253_vm6, %v240_v48, %v243_v49  ;;  %v265_v55 = vsel %vm253_vm6, %v243_v49, %v246_v50  ;;  %v262_v57 = vsel %vm256_vm7, %v249_v51, 920167782 }
  0xf0   :  { %v266_v58 = vsel %vm256_vm7, %v252_v52, 1326507024  ;;  %v263_v59 = vsel %vm255_vm8, %v246_v50, %v262_v57  ;;  %v257_v62 = vsel %vm253_vm6, %v237_v56, %v240_v48  ;;  %v259_v63 = vsel %vm255_vm8, %v243_v49, %v258_v53  ;;  %v779_v53 = vld [vmem:[%s1171_s7] ss:$0 sm:$0xff] }
  0xf1   :  { %v267_v60 = vsel %vm255_vm8, %v249_v51, %v266_v58  ;;  %v264_v1 = vsel %vm254_vm9, %v261_v54, %v263_v59  ;;  %v260_v9 = vsel %vm254_vm9, %v257_v62, %v259_v63  ;;  %vm313_vm6 = vweird.f32 %v1072_v20  ;;  %v428_v62 = vpop.permute.xlu0 %427 }
  0xf2   :  { %v268_v2 = vsel %vm254_vm9, %v265_v55, %v267_v60  ;;  %v1081_v7 = vmul.u32.u64.low %v269_v61, %v264_v1  ;;  %v1082_v8 = vmul.u32.u64.high %v269_v61, %v264_v1, %v1081_v7  ;;  %v276_v11 = vmul.u32 %v269_v61, %v260_v9  ;;  %v434_v1 = vpop.permute.xlu1 %433 }
  0xf3   :  { %v1078_v3 = vmul.u32.u64.low %v269_v61, %v268_v2  ;;  %v1079_v6 = vmul.u32.u64.high %v269_v61, %v268_v2, %v1078_v3  ;;  %v573_v61 = vld [vmem:[%s1172_s9] sm:$0xf]  ;;  %v448_v63 = vsel %vm135_vm4, %v1060_v13, %v428_v62  ;;  %vm412_vm7 = vcmask 64512  }
  0xf4   :  { %v279_v10 = vadd.s32 1, %v1082_v8  ;;  %vm450_vm8 = vcmask 97280   ;;  %vm452_vm9 = vcmask 130048  }
  0xf5   :  { %vm278_vm10 = vc.u32 %v1079_v6, %v1081_v7  ;;  %v277_v26 = vadd.s32 %v1081_v7, %v1079_v6  ;;  %v431_v2 = vpop.permute.xlu0 %430 }
  0xf6   :  { %v280_v12 = vsel %vm278_vm10, %v279_v10, %v1082_v8  ;;  %v449_v3 = vsel %vm412_vm7, %v448_v63, %v431_v2  ;;  %v437_v6 = vpop.permute.xlu1 %436  ;;  %vm454_vm10 = vcmask 162816  }
  0xf7   :  { %v281_v14 = vadd.s32 %v280_v12, %v276_v11  ;;  %v451_v7 = vsel %vm450_vm8, %v449_v3, %v434_v1 }
  0xf8   :  { %v453_v8 = vsel %vm452_vm9, %v451_v7, %v437_v6 }
  0xf9   :  { %v282_v15 = vadd.s32 536870912, %v281_v14  ;;  %v440_v9 = vpop.permute.xlu0 %439 }
  0xfa   :  { %v455_v10 = vsel %vm454_vm10, %v453_v8, %v440_v9  ;;  %v443_v11 = vpop.permute.xlu1 %442 }
  0xfb   :  { %v283_v16 = vshrl.u32 %v282_v15, 30 }
  0xfd   :  { %v284_v17 = vshll.u32 %v283_v16, 30  ;;  %v307_v38 = vsub.s32 4, %v283_v16  ;;  %v446_v12 = vpop.permute.xlu0 %445 }
  0xff   :  { %v285_v18 = vsub.s32 %v281_v14, %v284_v17  ;;  %v308_v41 = vsel %vm223_vm12, %v307_v38, %v283_v16  ;;  %v655_v38 = vld [vmem:[%s1174_s11] sm:$0xff] }
 0x100   :  { %v310_v43 = vsel %vm222_vm13, 0, %v308_v41  ;;  %v782_v41 = vld [vmem:[%s1175_s10] ss:$0 sm:$0xff] }
 0x101   :  { %v287_v19 = vsub.s32 0, %v285_v18  ;;  %v314_v44 = vadd.s32 3, %v310_v43  ;;  %v658_v43 = vld [vmem:[%s1174_s11 + $0x18] sm:$0xff] }
 0x103   :  { %v776_v21 = vmin.u32 %v287_v19, %v285_v18  ;;  %v315_v45 = vand.u32 3, %v314_v44 }
 0x105   :  { %v289_v22 = vclz %v776_v21  ;;  %vm320_vm14 = vcmp.eq.s32.totalorder %v315_v45, 2  ;;  %vm317_vm15 = vcmp.eq.s32.totalorder %v315_v45, 0  ;;  %vm316_vm0 = vcmp.lt.s32.totalorder %v315_v45, 2 }
 0x107   :  { %v777_v23 = vadd.s32 4294967294, %v289_v22  ;;  %v480_v22 = vld [vmem:[%s1173_s8] sm:$0xff] }
 0x109   :  { %vm778_vm11 = vcmp.lt.s32.totalorder %v777_v23, 0 }
 0x10a   :  { %v292_v24 = vsel %vm778_vm11, 0, %v777_v23  ;;  %vm458_vm11 = vcmask 228352   ;;  %v481_v23 = vld [vmem:[%s1173_s8 + $0x8] sm:$0xff] }
 0x10b   :  { %v293_v27 = vsub.s32 32, %v292_v24  ;;  %v297_v28 = vsub.s32 4294967266, %v292_v24  ;;  %v294_v29 = vshll.u32 %v285_v18, %v292_v24  ;;  %v482_v24 = vld [vmem:[%s1173_s8 + $0x10] sm:$0xff] }
 0x10d   :  { %v295_v30 = vshrl.u32 %v277_v26, %v293_v27  ;;  %v298_v31 = vadd.s32 127, %v297_v28  ;;  %v865_v26 = vpack.c.bf16 %v481_v23, %v480_v22  ;;  %v483_v27 = vld [vmem:[%s1173_s8 + $0x18] sm:$0xff] }
 0x10e   :  { %v868_v28 = vpack.c.bf16 %v483_v27, %v482_v24 }
 0x10f   :  { %v296_v32 = vor.u32 %v295_v30, %v294_v29  ;;  %v299_v33 = vshll.u32 %v298_v31, 23  ;;  %866 = vmatpush3.bf16.msra.mxu1 %v865_v26 }
 0x110   :  { %867 = vmatprep.subr.bf16.mxu1 %v915_v5 }
 0x111   :  { %v300_v34 = vor.u32 4788187, %v299_v33  ;;  %v303_v36 = vcvt.s32.f32 %v296_v32 }
 0x113   :  { %v301_v35 = vand.u32 2147483647, %v300_v34  ;;  %869 = vmatpush3.bf16.msra.mxu1 %v868_v28 }
 0x114   :  { %870 = vmatprep.subr.bf16.mxu1 %v915_v5 }
 0x115   :  { %v304_v37 = vmul.f32 %v303_v36, %v301_v35 }
 0x117   :  { %v305_v39 = vxor.u32 2147483648, %v304_v37 }
 0x119   :  { %v306_v40 = vsel %vm223_vm12, %v305_v39, %v304_v37  ;;  %v656_v39 = vld [vmem:[%s1174_s11 + $0x8] sm:$0xff] }
 0x11a   :  { %v309_v42 = vsel %vm222_vm13, %v1072_v20, %v306_v40  ;;  %v871_v40 = vpack.c.bf16 %v656_v39, %v655_v38 }
 0x11b   :  { %899 = vcosq.f32 %v309_v42 }
 0x11c   :  { %901 = vsinq.f32 %v309_v42  ;;  %v657_v42 = vld [vmem:[%s1174_s11 + $0x10] sm:$0xff] }
 0x125   :  { %v900_v46 = vpop.eup %899 }
 0x126   :  { %v902_v47 = vpop.eup %901  ;;  %v321_v48 = vxor.u32 2147483648, %v900_v46 }
 0x127   :  { %v318_v49 = vxor.u32 2147483648, %v902_v47 }
 0x128   :  { %v322_v50 = vsel %vm320_vm14, %v321_v48, %v902_v47 }
 0x129   :  { %v319_v51 = vsel %vm317_vm15, %v900_v46, %v318_v49  ;;  %v874_v46 = vpack.c.bf16 %v658_v43, %v657_v42 }
 0x12a   :  { %v323_v25 = vsel %vm316_vm0, %v319_v51, %v322_v50 }
 0x12b   :  { %v324_v52 = vsel %vm313_vm6, nan, %v323_v25 }
 0x12c   :  { %829 = vmatmul.mubr.msk.f32.vlgmr.msra.gmra.mrb[2].mxu0 %vm336_vm5, %v324_v52 }
 0x12d   :  { %844 = vmatprep.mubr.msk.f32.mxu0 %vm914_vm3, %v913_v0  ;;  %843 = vmatpush3.msk.msra.mxu0 %vm139_vm1, %v573_v61  ;;  %vm456_vm1 = vcmask 195584   ;;  %v20_v61 = vstv %s1178_s14 }
 0x12e   :  { %21 = vst [vmem:[#allocation2] sm:$0x1] %v20_v61 }
 0x130   :  { %845 = vmatmul.mubr.msk.f32.vlgmr.msra.gmra.mrb[4].mxu0 %vm135_vm4, %v1028_v4  ;;  %v457_v4 = vsel %vm456_vm1, %v455_v10, %v443_v11 }
 0x131   :  { %v459_v14 = vsel %vm458_vm11, %v457_v4, %v446_v12 }
 0x135   :  { %v788_v2 = vld [vmem:[#allocation2] ss:$0 sm:$0xff] }
 0x1ff   :  { %v406_v54 = vpop.f32.mrb[2].mxu0 }
 0x200   :  { %v407_v55 = vadd.f32 %v779_v53, %v406_v54  ;;  %v830_v56 = vpop.f32.mrb[3].mxu0 }
 0x202   :  { %v410_v57 = vmax.f32 %v407_v55, -20.0  ;;  %464 = vrot.lane.b32.xlu1 %v407_v55, %s929_s25  ;;  %v413_v21 = vsel %vm412_vm7, %v407_v55, -inf }
 0x203   :  { %v650_v31 = vpop.f32.mrb[4].mxu0 }
 0x204   :  { %v411_v20 = vmin.f32 %v410_v57, 4.0  ;;  %v846_v32 = vpop.f32.mrb[5].mxu0  ;;  %v651_v45 = vadd.f32 %v782_v41, %v650_v31 }
 0x206   :  { %v460_v58 = vsub.f32 0.0, %v411_v20  ;;  %v654_v47 = vmax.f32 %v651_v45, 0.0 }
 0x208   :  { %v461_v59 = vmul.f32 1.442695, %v460_v58 }
 0x20a   :  { %903 = vpow2.f32 %v461_v59 }
 0x214   :  { %v904_v60 = vpop.eup %903 }
 0x215   :  { %469 = vrot.lane.b32.xlu0 %v904_v60, %s930_s0 }
 0x274   :  { %v465_v13 = vpop.permute.xlu1 %464 }
 0x275   :  { %v467_v15 = vsub.f32 %v459_v14, %v465_v13 }
 0x287   :  { %v470_v16 = vpop.permute.xlu0 %469 }
 0x288   :  { %v472_v17 = vmul.f32 %v470_v16, %v467_v15 }
 0x28a   :  { %v473_v18 = vmul.f32 0.5, %v472_v17 }
 0x28c   :  { %v474_v19 = vmul.f32 %v473_v18, %v472_v17 }
 0x28e   :  { %476 = vrot.lane.b32.xlu1 %v474_v19, %s918_s6 }
 0x2b2   :  { %414 = vmax.xlane.f32.xlu1 %v413_v21 }
 0x300   :  { %v477_v29 = vpop.permute.xlu1 %476 }
 0x301   :  { %v479_v30 = vadd.f32 %v477_v29, %v411_v20  ;;  %v787_v20 = vld [vmem:[%s1177_s13] ss:$0 sm:$0xff] }
 0x303   :  { %485 = vrot.lane.b32.xlu0 %v479_v30, %s930_s0 }
 0x33f   :  { %v415_v33 = vpop.xlane.xlu1 %414 }
 0x340   :  { %v416_v34 = vsub.f32 %v407_v55, %v415_v33 }
 0x342   :  { %v417_v35 = vmul.f32 1.442695, %v416_v34 }
 0x344   :  { %905 = vpow2.f32 %v417_v35 }
 0x34e   :  { %v906_v36 = vpop.eup %905 }
 0x34f   :  { %v419_v37 = vsel %vm412_vm7, %v906_v36, 0.0 }
 0x350   :  { %420 = vadd.xlane.f32.xlu0 %v419_v37 }
 0x375   :  { %v486_v44 = vpop.permute.xlu0 %485 }
 0x376   :  { %840 = vmatmul.mubr.msk.f32.vlgmr.msra.gmra.mrb[2].mxu1 %vm336_vm5, %v486_v44 }
 0x377   :  { %872 = vmatpush3.bf16.msra.mxu1 %v871_v40  ;;  %855 = vmatprep.mubr.msk.f32.mxu1 %vm914_vm3, %v913_v0  ;;  %v785_v0 = vld [vmem:[%s1176_s12] ss:$0 sm:$0xff]  ;;  %s931_s12 = smov 1   ;;  %vm763_vm3 = vcmask 7168  }
 0x378   :  { %873 = vmatprep.subr.bf16.mxu1 %v915_v5 }
 0x37b   :  { %875 = vmatpush3.bf16.msra.mxu1 %v874_v46 }
 0x37e   :  { %856 = vmatmul.mubr.msk.f32.vlgmr.msra.gmra.mrb[4].mxu1 %vm336_vm5, %v654_v47 }
 0x3dd   :  { %v421_v48 = vpop.xlane.xlu0 %420 }
 0x3de   :  { %907 = vlog2.f32 %v421_v48 }
 0x3e8   :  { %v908_v49 = vpop.eup %907 }
 0x3e9   :  { %v423_v50 = vmul.f32 0.6931472, %v908_v49 }
 0x3eb   :  { %v424_v53 = vsub.f32 %v416_v34, %v423_v50 }
 0x449   :  { %v555_v51 = vpop.f32.mrb[2].mxu1 }
 0x44a   :  { %v559_v25 = vsub.f32 0.0, %v555_v51  ;;  %v841_v52 = vpop.f32.mrb[3].mxu1 }
 0x44c   :  { %v560_v54 = vadd.f32 %v559_v25, %v424_v53 }
 0x44e   :  { %v561_v55 = vsel %vm412_vm7, %v560_v54, -inf }
 0x44f   :  { %562 = vmax.xlane.f32.xlu0 %v561_v55 }
 0x451   :  { %v735_v5 = vpop.f32.mrb[4].mxu1 }
 0x452   :  { %v736_v56 = vadd.f32 %v785_v0, %v735_v5  ;;  %v857_v57 = vpop.f32.mrb[5].mxu1 }
 0x454   :  { %v739_v58 = vmax.f32 %v736_v56, 0.0 }
 0x456   :  { %v747_v59 = vmul.f32 %v787_v20, %v739_v58 }
 0x458   :  { %v748_v60 = vsel %vm336_vm5, %v747_v59, 0.0 }
 0x459   :  { %749 = vadd.xlane.f32.xlu1 %v748_v60 }
 0x4dc   :  { %v563_v62 = vpop.xlane.xlu0 %562 }
 0x4dd   :  { %v564_v63 = vsub.f32 %v560_v54, %v563_v62 }
 0x4df   :  { %v565_v1 = vmul.f32 1.442695, %v564_v63 }
 0x4e1   :  { %909 = vpow2.f32 %v565_v1 }
 0x4e6   :  { %v750_v3 = vpop.xlane.xlu1 %749 }
 0x4e7   :  { %v758_v6 = vadd.f32 %v788_v2, %v750_v3 }
 0x4e9   :  { %760 = vrot.lane.b32.xlu1 %v758_v6, %s931_s12 }
 0x4eb   :  { %v910_v7 = vpop.eup %909 }
 0x4ec   :  { %v567_v8 = vsel %vm412_vm7, %v910_v7, 0.0 }
 0x4ed   :  { %568 = vadd.xlane.f32.xlu0 %v567_v8 }
 0x55b   :  { %v761_v4 = vpop.permute.xlu1 %760 }
 0x57a   :  { %v569_v9 = vpop.xlane.xlu0 %568 }
 0x57b   :  { %911 = vlog2.f32 %v569_v9 }
 0x585   :  { %v912_v10 = vpop.eup %911 }
 0x586   :  { %v571_v11 = vmul.f32 0.6931472, %v912_v10 }
 0x588   :  { %v572_v12 = vadd.f32 %v571_v11, %v563_v62 }
 0x58a   :  { %v764_v14 = vsel %vm763_vm3, %v572_v12, %v761_v4 }
 0x58b   :  { %765 = vst.msk [vmem:[%s1179_s15] sm:$0xff] %vm57_vm2, %v764_v14 }

</bundles_post_ra>
